<compile_context>
chip_gen: v7x
topology: tpu7x:2x2x1
jax: 0.10.0
libtpu: 0.0.40
codegen_flags: <defaults>
</compile_context>

<pallas_src>
import functools

import jax
import jax.numpy as jnp
from jax.experimental import pallas as pl
from jax.experimental.pallas import tpu as pltpu


def _round_up(a, b):
    return ((a + b - 1) // b) * b


def _cdiv(a, b):
    return (a + b - 1) // b


def _vmem_budget_bytes():
    """Per-generation VMEM budget (scoped limit passed to the compiler)."""
    cap = None
    try:
        info = pltpu.get_tpu_info()
        for name in ("vmem_capacity_bytes", "vmem_size_bytes", "vmem_bytes"):
            cap = getattr(info, name, None)
            if cap:
                break
    except Exception:
        cap = None
    if not cap:
        return 56 * 1024 * 1024                       # unknown: safe default
    if cap <= 64 * 1024 * 1024:                       # v7x: 64 MiB / TensorCore
        return 46 * 1024 * 1024                       # leave spill headroom
    return int(min(cap - 24 * 1024 * 1024, 104 * 1024 * 1024))  # v5e / v6e


# ---------------------------------------------------------------------------
# Kernels
# ---------------------------------------------------------------------------

def _sigmoid_tanh(z):
    # sigmoid(z) == 0.5*(1 + tanh(z/2)): single EUP op instead of exp + recip.
    return 0.5 * (1.0 + jnp.tanh(0.5 * z))


def _highway_resident_kernel(x_ref, wf_ref, bf_ref, o_ref, *, layer_num, d_pad,
                             matmul_dtype):
    # x_ref : (tm, Dp)         row tile of the (padded) input
    # wf_ref: (n, Dp, 2*Dp)    fused [linear | gate] weights (matmul dtype)
    # bf_ref: (n, 1, 2*Dp)     fused [linear | gate] biases (f32)
    x0 = x_ref[...].astype(jnp.float32)

    def layer(i, x):
        pre = jnp.dot(x.astype(matmul_dtype), wf_ref[i],
                      preferred_element_type=jnp.float32) + bf_ref[i]
        nonlinear = jnp.maximum(pre[:, :d_pad], 0.0)     # relu(linear)
        gate = _sigmoid_tanh(pre[:, d_pad:])             # sigmoid(gate)
        return x + gate * (nonlinear - x)                # == g*nl + (1-g)*x

    # fori_loop (not a static Python unroll) bounds the live ranges of the
    # (tm, 2Dp) intermediates to one layer; unroll only shallow stacks.
    x = jax.lax.fori_loop(0, layer_num, layer, x0, unroll=layer_num <= 4)
    o_ref[...] = x.astype(o_ref.dtype)


def _highway_stream_kernel(x_ref, wf_ref, bf_ref, o_ref, x_carry, *, d_pad,
                           matmul_dtype):
    # Streaming mode: grid = (row_tiles, layer_num), one layer's weights per
    # grid step (auto double-buffered -> layer l+1 prefetch hides under l).
    # x_ref : (tm, Dp); wf_ref: (1, Dp, 2*Dp); bf_ref: (1, 1, 2*Dp)
    # x_carry: VMEM scratch (tm, Dp) f32 carrying x across the layer axis.
    l = pl.program_id(1)

    @pl.when(l == 0)
    def _():
        x_carry[...] = x_ref[...].astype(jnp.float32)

    x = x_carry[...]
    pre = jnp.dot(x.astype(matmul_dtype), wf_ref[0],
                  preferred_element_type=jnp.float32) + bf_ref[0]
    nonlinear = jnp.maximum(pre[:, :d_pad], 0.0)
    gate = _sigmoid_tanh(pre[:, d_pad:])
    x_carry[...] = x + gate * (nonlinear - x)

    @pl.when(l == pl.num_programs(1) - 1)
    def _():
        o_ref[...] = x_carry[...].astype(o_ref.dtype)


# ---------------------------------------------------------------------------
# pallas_call wrappers
# ---------------------------------------------------------------------------

def _run_resident(xp, wf, bfb, *, tm, d_pad, layer_num, matmul_dtype,
                  vmem_limit):
    m_pad = xp.shape[0]
    n = wf.shape[0]
    kernel = functools.partial(_highway_resident_kernel, layer_num=layer_num,
                               d_pad=d_pad, matmul_dtype=matmul_dtype)
    return pl.pallas_call(
        kernel,
        out_shape=jax.ShapeDtypeStruct((m_pad, d_pad), xp.dtype),
        grid_spec=pltpu.PrefetchScalarGridSpec(
            num_scalar_prefetch=0,
            grid=(m_pad // tm,),
            in_specs=[
                pl.BlockSpec((tm, d_pad), lambda i: (i, 0)),         # x tile
                pl.BlockSpec((n, d_pad, 2 * d_pad),
                             lambda i: (0, 0, 0)),                   # fused W
                pl.BlockSpec((n, 1, 2 * d_pad),
                             lambda i: (0, 0, 0)),                   # fused b
            ],
            out_specs=pl.BlockSpec((tm, d_pad), lambda i: (i, 0)),
        ),
        compiler_params=pltpu.CompilerParams(
            dimension_semantics=("parallel",),
            vmem_limit_bytes=vmem_limit,
        ),
    )(xp, wf, bfb)


def _run_stream(xp, wf, bfb, *, tm, d_pad, layer_num, matmul_dtype,
                vmem_limit):
    m_pad = xp.shape[0]
    kernel = functools.partial(_highway_stream_kernel, d_pad=d_pad,
                               matmul_dtype=matmul_dtype)
    return pl.pallas_call(
        kernel,
        out_shape=jax.ShapeDtypeStruct((m_pad, d_pad), xp.dtype),
        grid_spec=pltpu.PrefetchScalarGridSpec(
            num_scalar_prefetch=0,
            grid=(m_pad // tm, layer_num),
            in_specs=[
                pl.BlockSpec((tm, d_pad), lambda i, l: (i, 0)),          # x
                pl.BlockSpec((1, d_pad, 2 * d_pad), lambda i, l: (l, 0, 0)),
                pl.BlockSpec((1, 1, 2 * d_pad), lambda i, l: (l, 0, 0)),
            ],
            out_specs=pl.BlockSpec((tm, d_pad), lambda i, l: (i, 0)),
            scratch_shapes=[pltpu.VMEM((tm, d_pad), jnp.float32)],
        ),
        compiler_params=pltpu.CompilerParams(
            dimension_semantics=("parallel", "arbitrary"),
            vmem_limit_bytes=vmem_limit,
        ),
    )(xp, wf, bfb)


# ---------------------------------------------------------------------------
# Public API
# ---------------------------------------------------------------------------

def fuse_highway_params(wl, bl, wg, bg, matmul_dtype=jnp.bfloat16):
    """Pad + fuse [linear | gate] params. Call ONCE per parameter set
    (hoisted out of the per-forward hot path).

    wl, wg : (n, D, D) weights in (in, out) layout (x @ W == PyTorch Linear).
    bl, bg : (n, D) biases.
    Returns (wf, bfb, D) with wf: (n, Dp, 2Dp) matmul_dtype, bfb: (n, 1, 2Dp) f32.
    """
    n, D, _ = wl.shape
    Dp = _round_up(D, 128)
    wf = jnp.zeros((n, Dp, 2 * Dp), matmul_dtype)
    wf = wf.at[:, :D, :D].set(wl.astype(matmul_dtype))
    wf = wf.at[:, :D, Dp:Dp + D].set(wg.astype(matmul_dtype))
    bfb = jnp.zeros((n, 1, 2 * Dp), jnp.float32)
    bfb = bfb.at[:, 0, :D].set(bl.astype(jnp.float32))
    bfb = bfb.at[:, 0, Dp:Dp + D].set(bg.astype(jnp.float32))
    return wf, bfb, D


def highway_forward(x, fused_params, *, tile_m=512, force_stream=None):
    """Highway forward.

    x            : (..., D) activations.
    fused_params : output of fuse_highway_params (precomputed once).
    force_stream : None = auto (based on VMEM budget), True/False = override.
    """
    wf, bfb, D = fused_params
    orig_shape = x.shape
    assert orig_shape[-1] == D, "feature dim mismatch with fused params"
    x2d = x.reshape(-1, D)
    M = x2d.shape[0]
    n, Dp, _ = wf.shape
    matmul_dtype = wf.dtype

    # Row tile: big for roofline (small Dp -> even bigger), but keep >= 2 row
    # tiles so both v7x TensorCores get work from the "parallel" axis.
    if Dp <= 256:
        tile_m = max(tile_m, 1024)
    tm = _round_up(min(tile_m, max(M, 8)), 8)
    while tm > 8 and _cdiv(M, tm) < 2:
        tm = _round_up(tm // 2, 8)
    Mp = _round_up(M, tm)

    # Zero-pad x. Padded rows acquire nonzero values after layer 1
    # (gate*relu(bias)) but are sliced off below and never read.
    if (Mp, Dp) != (M, D):
        xp = jnp.zeros((Mp, Dp), x2d.dtype).at[:M, :D].set(x2d)
    else:
        xp = x2d

    vmem_limit = _vmem_budget_bytes()

    if force_stream is None:
        # Estimate of the resident-weights footprint (weights are default
        # double-buffered; constant index_map means they're only DMA'd once).
        weight_bytes = wf.size * jnp.dtype(matmul_dtype).itemsize
        bias_bytes = bfb.size * 4
        resident_est = (2 * weight_bytes + 2 * bias_bytes
                        + 4 * tm * Dp * jnp.dtype(x2d.dtype).itemsize
                        + 10 * tm * Dp * 4)          # f32 temporaries
        use_stream = resident_est > vmem_limit
    else:
        use_stream = bool(force_stream)

    run = _run_stream if use_stream else _run_resident
    out = run(xp, wf, bfb, tm=tm, d_pad=Dp, layer_num=n,
              matmul_dtype=matmul_dtype, vmem_limit=vmem_limit)
    return out[:M, :D].reshape(orig_shape)


# ---------------------------------------------------------------------------
# Reference + init
# ---------------------------------------------------------------------------

def init_highway_params(key, layer_num, size, dtype=jnp.float32):
    """Deterministic init mimicking nn.Linear default U(-1/sqrt(size), 1/sqrt(size))."""
    bound = 1.0 / (size ** 0.5)
    keys = jax.random.split(key, 4)
    # Weights stored as (n, D_in, D_out) so the kernel does x @ W directly.
    wl = jax.random.uniform(keys[0], (layer_num, size, size), dtype, -bound, bound)
    bl = jax.random.uniform(keys[1], (layer_num, size), dtype, -bound, bound)
    wg = jax.random.uniform(keys[2], (layer_num, size, size), dtype, -bound, bound)
    bg = jax.random.uniform(keys[3], (layer_num, size), dtype, -bound, bound)
    return wl, bl, wg, bg


def highway_ref(x, wl, bl, wg, bg):
    """Pure-JAX f32 reference of the PyTorch forward."""
    n = wl.shape[0]
    for i in range(n):
        gate = jax.nn.sigmoid(x @ wg[i] + bg[i])
        nonlinear = jax.nn.relu(x @ wl[i] + bl[i])
        x = gate * nonlinear + (1.0 - gate) * x
    return x


if __name__ == "__main__":
    key = jax.random.PRNGKey(0)
    k_x, k_p = jax.random.split(key)

    layer_num = 2
    batch, seq, hidden = 2, 8, 32

    x = jax.random.normal(k_x, (batch, seq, hidden), dtype=jnp.float32)
    wl, bl, wg, bg = init_highway_params(k_p, layer_num, hidden)

    # Fuse/pad params ONCE (hoisted out of the per-forward hot path).
    fused = fuse_highway_params(wl, bl, wg, bg)

    ref = highway_ref(x.reshape(-1, hidden), wl, bl, wg, bg).reshape(x.shape)

    # Resident-weights path (default for small n*D*D).
    out = jax.block_until_ready(highway_forward(x, fused))
    assert out.shape == x.shape
    # bf16 matmul inputs (f32 accumulation) vs. the f32 reference -> looser tol.
    assert jnp.allclose(out, ref, atol=3e-2, rtol=1e-2), "resident path mismatch"

    # Weight-streaming path (auto-selected when n*Dp*2Dp exceeds the VMEM
    # budget, e.g. large D on v7x); force it here to validate correctness.
    out_s = jax.block_until_ready(highway_forward(x, fused, force_stream=True))
    assert jnp.allclose(out_s, ref, atol=3e-2, rtol=1e-2), "streaming path mismatch"

    print("KERNEL_OK")
</pallas_src>

<mosaic_0001>
module attributes {stable_mosaic.version = 11 : i64} {
  func.func @_highway_resident_kernel(%arg0: i32, %arg1: memref<8x128xf32, #tpu.memory_space<vmem>>, %arg2: memref<2x128x256xbf16, #tpu.memory_space<vmem>>, %arg3: memref<2x1x256xf32, #tpu.memory_space<vmem>>, %arg4: memref<8x128xf32, #tpu.memory_space<vmem>>) attributes {dimension_semantics = [#tpu.dimension_semantics<parallel>], iteration_bounds = array<i64: 2>, scalar_prefetch = 0 : i64, scratch_operands = 0 : i64, tpu.core_type = #tpu.core_type<tc>, window_params = [{transform_indices = @transform_0, window_bounds = array<i64: 8, 128>}, {pipeline_mode = #tpu.pipeline_mode<synchronous>, transform_indices = @transform_1, window_bounds = array<i64: 2, 128, 256>}, {pipeline_mode = #tpu.pipeline_mode<synchronous>, transform_indices = @transform_2, window_bounds = array<i64: 2, 1, 256>}, {transform_indices = @transform_3, window_bounds = array<i64: 8, 128>}]} {
    %c0 = arith.constant 0 : index
    %c0_0 = arith.constant 0 : index
    %0 = vector.load %arg1[%c0, %c0_0] : memref<8x128xf32, #tpu.memory_space<vmem>>, vector<8x128xf32>
    %c0_i32 = arith.constant 0 : i32
    %1 = arith.truncf %0 : vector<8x128xf32> to vector<8x128xbf16>
    %2 = arith.index_cast %c0_i32 : i32 to index
    %c0_1 = arith.constant 0 : index
    %c0_2 = arith.constant 0 : index
    %3 = vector.load %arg2[%2, %c0_1, %c0_2] : memref<2x128x256xbf16, #tpu.memory_space<vmem>>, vector<1x128x256xbf16>
    %4 = vector.shape_cast %3 : vector<1x128x256xbf16> to vector<128x256xbf16>
    %cst = arith.constant dense<0.000000e+00> : vector<8x256xf32>
    %5 = tpu.matmul %1, %4, %cst {dimension_numbers = #tpu.dot_dimension_numbers<[1], [0], [0], [1], [0, 0, 1, 1], [], []>} : vector<8x128xbf16>, vector<128x256xbf16>, vector<8x256xf32> -> vector<8x256xf32>
    %6 = arith.index_cast %c0_i32 : i32 to index
    %c0_3 = arith.constant 0 : index
    %c0_4 = arith.constant 0 : index
    %7 = vector.load %arg3[%6, %c0_3, %c0_4] : memref<2x1x256xf32, #tpu.memory_space<vmem>>, vector<1x1x256xf32>
    %8 = vector.shape_cast %7 : vector<1x1x256xf32> to vector<1x256xf32>
    %9 = vector.broadcast %8 : vector<1x256xf32> to vector<8x256xf32>
    %10 = arith.addf %5, %9 : vector<8x256xf32>
    %11 = vector.extract_strided_slice %10 {offsets = [0, 0], sizes = [8, 128], strides = [1, 1]} : vector<8x256xf32> to vector<8x128xf32>
    %cst_5 = arith.constant 0.000000e+00 : f32
    %12 = vector.broadcast %cst_5 : f32 to vector<8x128xf32>
    %13 = arith.maximumf %11, %12 : vector<8x128xf32>
    %14 = vector.extract_strided_slice %10 {offsets = [0, 128], sizes = [8, 128], strides = [1, 1]} : vector<8x256xf32> to vector<8x128xf32>
    %cst_6 = arith.constant 5.000000e-01 : f32
    %15 = vector.broadcast %cst_6 : f32 to vector<8x128xf32>
    %16 = arith.mulf %15, %14 : vector<8x128xf32>
    %17 = math.tanh %16 : vector<8x128xf32>
    %cst_7 = arith.constant 1.000000e+00 : f32
    %18 = vector.broadcast %cst_7 : f32 to vector<8x128xf32>
    %19 = arith.addf %18, %17 : vector<8x128xf32>
    %cst_8 = arith.constant 5.000000e-01 : f32
    %20 = vector.broadcast %cst_8 : f32 to vector<8x128xf32>
    %21 = arith.mulf %20, %19 : vector<8x128xf32>
    %22 = arith.subf %13, %0 : vector<8x128xf32>
    %23 = arith.mulf %21, %22 : vector<8x128xf32>
    %24 = arith.addf %0, %23 : vector<8x128xf32>
    %c1_i32 = arith.constant 1 : i32
    %25 = arith.truncf %24 : vector<8x128xf32> to vector<8x128xbf16>
    %26 = arith.index_cast %c1_i32 : i32 to index
    %c0_9 = arith.constant 0 : index
    %c0_10 = arith.constant 0 : index
    %27 = vector.load %arg2[%26, %c0_9, %c0_10] : memref<2x128x256xbf16, #tpu.memory_space<vmem>>, vector<1x128x256xbf16>
    %28 = vector.shape_cast %27 : vector<1x128x256xbf16> to vector<128x256xbf16>
    %cst_11 = arith.constant dense<0.000000e+00> : vector<8x256xf32>
    %29 = tpu.matmul %25, %28, %cst_11 {dimension_numbers = #tpu.dot_dimension_numbers<[1], [0], [0], [1], [0, 0, 1, 1], [], []>} : vector<8x128xbf16>, vector<128x256xbf16>, vector<8x256xf32> -> vector<8x256xf32>
    %30 = arith.index_cast %c1_i32 : i32 to index
    %c0_12 = arith.constant 0 : index
    %c0_13 = arith.constant 0 : index
    %31 = vector.load %arg3[%30, %c0_12, %c0_13] : memref<2x1x256xf32, #tpu.memory_space<vmem>>, vector<1x1x256xf32>
    %32 = vector.shape_cast %31 : vector<1x1x256xf32> to vector<1x256xf32>
    %33 = vector.broadcast %32 : vector<1x256xf32> to vector<8x256xf32>
    %34 = arith.addf %29, %33 : vector<8x256xf32>
    %35 = vector.extract_strided_slice %34 {offsets = [0, 0], sizes = [8, 128], strides = [1, 1]} : vector<8x256xf32> to vector<8x128xf32>
    %cst_14 = arith.constant 0.000000e+00 : f32
    %36 = vector.broadcast %cst_14 : f32 to vector<8x128xf32>
    %37 = arith.maximumf %35, %36 : vector<8x128xf32>
    %38 = vector.extract_strided_slice %34 {offsets = [0, 128], sizes = [8, 128], strides = [1, 1]} : vector<8x256xf32> to vector<8x128xf32>
    %cst_15 = arith.constant 5.000000e-01 : f32
    %39 = vector.broadcast %cst_15 : f32 to vector<8x128xf32>
    %40 = arith.mulf %39, %38 : vector<8x128xf32>
    %41 = math.tanh %40 : vector<8x128xf32>
    %cst_16 = arith.constant 1.000000e+00 : f32
    %42 = vector.broadcast %cst_16 : f32 to vector<8x128xf32>
    %43 = arith.addf %42, %41 : vector<8x128xf32>
    %cst_17 = arith.constant 5.000000e-01 : f32
    %44 = vector.broadcast %cst_17 : f32 to vector<8x128xf32>
    %45 = arith.mulf %44, %43 : vector<8x128xf32>
    %46 = arith.subf %37, %24 : vector<8x128xf32>
    %47 = arith.mulf %45, %46 : vector<8x128xf32>
    %48 = arith.addf %24, %47 : vector<8x128xf32>
    %c2_i32 = arith.constant 2 : i32
    %c0_18 = arith.constant 0 : index
    %c0_19 = arith.constant 0 : index
    %49 = vector.load %arg4[%c0_18, %c0_19] : memref<8x128xf32, #tpu.memory_space<vmem>>, vector<8x128xf32>
    tpu.vector_store %arg4[%c0_18, %c0_19], %48 {strides = array<i32>} : memref<8x128xf32, #tpu.memory_space<vmem>>, vector<8x128xf32>,
    return
  }
  func.func @transform_0(%arg0: i32) -> (i32, i32) {
    %c0_i32 = arith.constant 0 : i32
    %c0_i32_0 = arith.constant 0 : i32
    return %arg0, %c0_i32 : i32, i32
  }
  func.func @transform_1(%arg0: i32) -> (i32, i32, i32) {
    %c0_i32 = arith.constant 0 : i32
    %c0_i32_0 = arith.constant 0 : i32
    %c0_i32_1 = arith.constant 0 : i32
    %c0_i32_2 = arith.constant 0 : i32
    return %c0_i32, %c0_i32_0, %c0_i32_1 : i32, i32, i32
  }
  func.func @transform_2(%arg0: i32) -> (i32, i32, i32) {
    %c0_i32 = arith.constant 0 : i32
    %c0_i32_0 = arith.constant 0 : i32
    %c0_i32_1 = arith.constant 0 : i32
    %c0_i32_2 = arith.constant 0 : i32
    return %c0_i32, %c0_i32_0, %c0_i32_1 : i32, i32, i32
  }
  func.func @transform_3(%arg0: i32) -> (i32, i32) {
    %c0_i32 = arith.constant 0 : i32
    %c0_i32_0 = arith.constant 0 : i32
    return %arg0, %c0_i32 : i32, i32
  }
}

</mosaic_0001>

<bundles_post_ra>
// kernel: tpu_custom_call.1
= control target key start
LH: loop header
LB: loop body
LE: loop exit
PB: predicated region body
PF: predicated region fallthrough
CT: control target
= control target key end

     0   :  { %8 = vsyncpa [#allocation3], 0  ;;  %s1140_s0 = inlined_call_operand.hbm [shape: f32[16,128], index: 0, kind: input, shape index: {}]   ;;  %s1141_s1 = inlined_call_operand.hbm [shape: bf16[2,128,256], index: 1, kind: input, shape index: {}]   ;;  %s1142_s2 = inlined_call_operand.vmem [shape: f32[2,1,256], index: 2, kind: input, shape index: {}]   ;;  %s1143_s3 = inlined_call_operand.hbm [shape: f32[16,128], index: 3, kind: output, shape index: {}]  }
   0x1   :  { %10 = vsyncpa [#allocation3 + $0x1], 0 }
   0x2   :  { %11 = vsyncpa [#allocation6], 0 }
   0x3   :  { %12 = vsyncpa [#allocation4], 0 }
   0x4   :  { %14 = vsyncpa [#allocation4 + $0x1], 0  ;;  %s931_s12 = smov 0   ;;  %s933_s13 = smov 0  }
   0x5   :  { %s935_s14 = smov 0   ;;  %s937_s15 = smov 0  }
   0x6 LB: > { %s952_s16 = sadd.s32 4294967295, %s903_s15   ;;  %s616_s17 = sadd.s32 4294967294, %s903_s15   ;;  %s903_s15 = sphi %s937_s15, %s1163_s15   ;;  %s899_s14 = sphi %s935_s14, %s1162_s14   ;;  %s895_s13 = sphi %s933_s13, %s1161_s13   ;;  %s891_s12 = sphi %s931_s12, %s1160_s12  }
   0x7   : > { %p40_p0 = scmp.ne.s32.totalorder %s895_s13, %s891_s12  ;;  %p1144_p1 = scmp.eq.s32.totalorder %s952_s16, 0 }
   0x8   : > { %p112_p3 = scmp.eq.s32.totalorder %s616_s17, 1  ;;  %p617_p5 = scmp.ge.s32.totalorder %s903_s15, 1 }
   0x9   : > { %p961_p4 = por %p1144_p1, %p40_p0  ;;  %p119_p7 = scmp.lt.s32.totalorder %s903_s15, 3 }
   0xa   : > { %p966_p6 = por %p112_p3, %p40_p0  ;;  %s905_s21 = smov [#allocation5]  }
   0xb   : > { %s1147_s18 = scalar_select %p961_p4, 1, 0 }
   0xc   : > { %s1148_s19 = scalar_select %p966_p6, 1, 0 }
   0xd   : > { %p971_p8 = pnand %p617_p5, %p119_p7  ;;  %s131_s22 = sshll.u32 %s905_s21, 4  ;;  %s975_s22 = int_to_ptr.vmem [resolvable:$true] %s131_s22 }
   0xe   : > { %s987_s24 = sadd.s32 1, %s903_s15   ;;  %s27_s25 = sadd.s32 1, %s899_s14 }
   0xf   : > { %s1149_s20 = scalar_select %p971_p8, 1, 0 }
  0x10   : > { %p671_p9 = pneg %p971_p8  ;;  %s24_s26 = ssub.s32 %s903_s15, %s987_s24 }
  0x11   : > { %s775_s29 = scalar_lea.hbm %s1141_s1, 4096 }
  0x12   : > { %p982_p11 = pnand %p671_p9, %p1144_p1  ;;  %p776_p12 = scmp.ne.s32.totalorder %s1141_s1, %s775_s29 }
  0x13   : > { %p782_p5 = scmp.lt.u32.totalorder %s775_s29, %s1141_s1 }
  0x14   : > { %p777_p13 = pneg %p982_p11 }
  0x16   : > { %p778_p0 = pnand %p777_p13, %p776_p12 }
  0x18   : > { %p779_p3 = pneg %p778_p0 }
  0x1a   : > { %p784_p7 = pnand %p782_p5, %p779_p3 }
  0x1c   : > { %787 = shalt.err (!%p784_p7)
}
  0x1d   : > { %s788_s7 = scalar_lea.vmem %s975_s22, 4096  ;;  %p796_p2 = scmp.lt.s32.totalorder %s975_s22, %s975_s22 }
  0x1e   : > { %p789_p9 = scmp.ne.s32.totalorder %s975_s22, %s788_s7  ;;  %p797_p6 = scmp.lt.s32.totalorder %s788_s7, %s788_s7 }
  0x20   : > { %p791_p10 = pnand %p789_p9, %p777_p13  ;;  %p798_p4 = por %p797_p6, %p796_p2 }
  0x22   : > { %p792_p1 = pneg %p791_p10 }
  0x24   : > { %p799_p8 = pnand %p798_p4, %p792_p1 }
  0x26   : > { %802 = shalt.err (!%p799_p8)
}
  0x27   : > { %s906_s8 = smov 128   ;;  %s907_s9 = smov 8  }
  0x28   : > { %674 = dma.hbm_to_vmem [thread:$0]  (!%p982_p11), %s1141_s1, 4096, %s975_s22, [#allocation6], %s906_s8, %s906_s8, %s907_s9  }
  0x29   : > { %p25_p2 = scmp.eq.s32.totalorder %s24_s26, 0  ;;  %p34_p1 = scmp.ne.s32.totalorder %s899_s14, %s895_s13 }
  0x2a   : > { %p35_p4 = scmp.eq.s32.totalorder %s903_s15, 0  ;;  %p684_p6 = scmp.lt.s32.totalorder %s903_s15, 2 }
  0x2b   : > { %s1018_s17 = scalar_select %p25_p2, %s899_s14, %s27_s25  }
  0x2c   : > { %p36_p8 = por %p35_p4, %p34_p1  ;;  %p1151_p10 = scmp.eq.s32.totalorder %s952_s16, 1 }
  0x2d   : > { %s148_s27 = sand.u32 1, %s899_s14   ;;  %s621_s28 = sshll.u32 %s903_s15, 7 }
  0x2e   : > { %p1022_p12 = por %p1151_p10, %p34_p1  ;;  %s620_s29 = sshll.u32 %s148_s27, 3 }
  0x2f   : > { %s1031_s4 = scalar_lea.hbm %s1140_s0, %s621_s28  ;;  %s152_s22 = scalar_lea.vmem [#allocation2], %s620_s29 }
  0x30   : > { %s159_s25 = sshll.u32 %s152_s22, 4  ;;  %p1033_p11 = pnand %p684_p6, %p36_p8  ;;  %s1037_s25 = int_to_ptr.vmem [resolvable:$true] %s159_s25 }
  0x31   : > { %s149_s5 = scalar_lea.sflag [#allocation3], %s148_s27  ;;  %s803_s6 = scalar_lea.hbm %s1031_s4, 128 }
  0x32   : > { %p804_p13 = scmp.ne.s32.totalorder %s1031_s4, %s803_s6  ;;  %p805_p0 = pneg %p1033_p11 }
  0x33   : > { %s808_s9 = scalar_lea.hbm %s1140_s0, 256  ;;  %p809_p7 = scmp.lt.u32.totalorder %s1031_s4, %s1140_s0 }
  0x34   : > { %p806_p3 = pnand %p805_p0, %p804_p13  ;;  %p810_p9 = scmp.lt.u32.totalorder %s808_s9, %s803_s6 }
  0x35   : > { %p812_p1 = scmp.lt.u32.totalorder %s803_s6, %s1031_s4 }
  0x36   : > { %p807_p5 = pneg %p806_p3  ;;  %p811_p2 = por %p810_p9, %p809_p7 }
  0x38   : > { %p813_p4 = por %p812_p1, %p811_p2 }
  0x3a   : > { %p814_p6 = pnand %p813_p4, %p807_p5 }
  0x3c   : > { %817 = shalt.err (!%p814_p6)
}
  0x3d   : > { %s818_s27 = scalar_lea.vmem %s1037_s25, 128  ;;  %s908_s28 = smov [#allocation2]  }
  0x3e   : > { %p819_p8 = scmp.ne.s32.totalorder %s1037_s25, %s818_s27  ;;  %s823_s29 = sshll.u32 %s908_s28, 4  ;;  %s824_s29 = int_to_ptr.vmem [resolvable:$false] %s823_s29 }
  0x3f   : > { %s825_s23 = scalar_lea.vmem %s824_s29, 256  ;;  %p826_p3 = scmp.lt.s32.totalorder %s1037_s25, %s824_s29 }
  0x40   : > { %p821_p10 = pnand %p819_p8, %p805_p0  ;;  %p827_p7 = scmp.lt.s32.totalorder %s825_s23, %s818_s27 }
  0x42   : > { %p822_p13 = pneg %p821_p10  ;;  %p828_p9 = por %p827_p7, %p826_p3 }
  0x44   : > { %p829_p2 = pnand %p828_p9, %p822_p13 }
  0x46   : > { %832 = shalt.err (!%p829_p2)
}
  0x47   : > { %678 = dma.hbm_to_vmem [thread:$0]  (!%p1033_p11), %s1031_s4, 128, %s1037_s25, %s149_s5  }
  0x48   : > { %p1154_p5 = scmp.ne.s32.totalorder %s1149_s20, 0 }
  0x49   : > { %s1067_s30 = sand.u32 (!%p1154_p5), 1, %s895_s13   ;;  %p1155_p0 = scmp.ne.s32.totalorder (!%p1154_p5), %s1147_s18, 0 }
  0x4a   : > { %168 = sbr.rel (%p1154_p5) target bundleno = 607 (0x25f), region = 32  ;;  %s623_s22 = sshll.u32 (!%p1154_p5), %s1067_s30, 3 }
  0x4b   : > { %s171_s6 = scalar_lea.sflag (!%p1154_p5), [#allocation3], %s1067_s30  ;;  %s1073_s7 = scalar_lea.vmem (!%p1154_p5), [#allocation2], %s623_s22 }
  0x51   : > { %878 = dma.done.wait (%p1155_p0), %s171_s6, 128  }
  0x52   : > { %880 = vsyncadd (%p1155_p0), %s171_s6, 4294967168  ;;  %p1156_p11 = scmp.eq.s32.totalorder %s952_s16, 0 }
  0x54   : > { %882 = dma.done.wait (%p1156_p11), [#allocation6], 4096   ;;  %p1157_p1 = pmov %p1156_p11 }
  0x55   : > { %v909_v0 = vmov 0   ;;  %v723_v1 = vld [vmem:[#allocation5 + $0x4] ss:$8 sps:$4 sm:$0xff]   ;;  %v725_v2 = vld [vmem:[#allocation5] ss:$8 sps:$4 sm:$0xff]   ;;  %v202_v20 = vld [vmem:[%s1073_s7] sm:$0xff]  ;;  %v222_v35 = vlaneseq }
  0x56   : > { %884 = vsyncadd (%p1157_p1), [#allocation6], 4294963200  ;;  %344 = vmatprep.mubr.bf16.mxu0 %v909_v0  ;;  %504 = vmatprep.mubr.bf16.mxu1 %v909_v0  ;;  %v726_v3 = vld [vmem:[#allocation5 + $0x14] ss:$8 sps:$4 sm:$0xff]   ;;  %v728_v4 = vld [vmem:[#allocation5 + $0x10] ss:$8 sps:$4 sm:$0xff]   ;;  %v203_v21 = vpack.c.bf16 %v202_v20, %v202_v20 }
  0x57   : > { %312 = vmatprep.subr.bf16.mxu0 %v723_v1  ;;  %v729_v5 = vld [vmem:[#allocation5 + $0x24] ss:$8 sps:$4 sm:$0xff]   ;;  %v731_v6 = vld [vmem:[#allocation5 + $0x20] ss:$8 sps:$4 sm:$0xff]   ;;  %v732_v7 = vld [vmem:[#allocation5 + $0x34] ss:$8 sps:$4 sm:$0xff]  }
  0x58   : > { %313 = vmatpush1.bf16.msra.mxu0 %v725_v2  ;;  %v734_v8 = vld [vmem:[#allocation5 + $0x30] ss:$8 sps:$4 sm:$0xff]   ;;  %v735_v9 = vld [vmem:[#allocation5 + $0x44] ss:$8 sps:$4 sm:$0xff]   ;;  %v749_v11 = vld [vmem:[#allocation5 + $0x80] ss:$8 sps:$4 sm:$0xff]  }
  0x59   : > { %314 = vmatprep.subr.bf16.mxu0 %v726_v3  ;;  %v747_v10 = vld [vmem:[#allocation5 + $0x84] ss:$8 sps:$4 sm:$0xff]   ;;  %v737_v12 = vld [vmem:[#allocation5 + $0x40] ss:$8 sps:$4 sm:$0xff]   ;;  %v750_v13 = vld [vmem:[#allocation5 + $0x94] ss:$8 sps:$4 sm:$0xff]  }
  0x5a   : > { %472 = vmatprep.subr.bf16.mxu1 %v747_v10  ;;  %v738_v14 = vld [vmem:[#allocation5 + $0x54] ss:$8 sps:$4 sm:$0xff]   ;;  %v740_v15 = vld [vmem:[#allocation5 + $0x50] ss:$8 sps:$4 sm:$0xff]   ;;  %v741_v16 = vld [vmem:[#allocation5 + $0x64] ss:$8 sps:$4 sm:$0xff]  }
  0x5b   : > { %473 = vmatpush1.bf16.msra.mxu1 %v749_v11  ;;  %v743_v17 = vld [vmem:[#allocation5 + $0x60] ss:$8 sps:$4 sm:$0xff]   ;;  %v744_v18 = vld [vmem:[#allocation5 + $0x74] ss:$8 sps:$4 sm:$0xff]   ;;  %v746_v19 = vld [vmem:[#allocation5 + $0x70] ss:$8 sps:$4 sm:$0xff]  }
  0x5c   : > { %315 = vmatpush1.bf16.msra.mxu0 %v728_v4  ;;  %474 = vmatprep.subr.bf16.mxu1 %v750_v13  ;;  %v752_v22 = vld [vmem:[#allocation5 + $0x90] ss:$8 sps:$4 sm:$0xff]   ;;  %v753_v23 = vld [vmem:[#allocation5 + $0xa4] ss:$8 sps:$4 sm:$0xff]   ;;  %v755_v24 = vld [vmem:[#allocation5 + $0xa0] ss:$8 sps:$4 sm:$0xff]  }
  0x5d   : > { %316 = vmatprep.subr.bf16.mxu0 %v729_v5  ;;  %v756_v25 = vld [vmem:[#allocation5 + $0xb4] ss:$8 sps:$4 sm:$0xff]   ;;  %v758_v26 = vld [vmem:[#allocation5 + $0xb0] ss:$8 sps:$4 sm:$0xff]   ;;  %v759_v27 = vld [vmem:[#allocation5 + $0xc4] ss:$8 sps:$4 sm:$0xff]  }
  0x5e   : > { %v761_v28 = vld [vmem:[#allocation5 + $0xc0] ss:$8 sps:$4 sm:$0xff]   ;;  %v762_v29 = vld [vmem:[#allocation5 + $0xd4] ss:$8 sps:$4 sm:$0xff]   ;;  %v764_v30 = vld [vmem:[#allocation5 + $0xd0] ss:$8 sps:$4 sm:$0xff]  }
  0x5f   : > { %475 = vmatpush1.bf16.msra.mxu1 %v752_v22  ;;  %v765_v31 = vld [vmem:[#allocation5 + $0xe4] ss:$8 sps:$4 sm:$0xff]   ;;  %v767_v32 = vld [vmem:[#allocation5 + $0xe0] ss:$8 sps:$4 sm:$0xff]   ;;  %v768_v33 = vld [vmem:[#allocation5 + $0xf4] ss:$8 sps:$4 sm:$0xff]  }
  0x60   : > { %317 = vmatpush1.bf16.msra.mxu0 %v731_v6  ;;  %476 = vmatprep.subr.bf16.mxu1 %v753_v23  ;;  %v770_v34 = vld [vmem:[#allocation5 + $0xf0] ss:$8 sps:$4 sm:$0xff]   ;;  %v223_v36 = vshrl.u32 %v222_v35, 7  ;;  %s660_s26 = sshll.u32 %s952_s16, 7  ;;  %s200_s5 = scalar_lea.vmem [#allocation7], %s623_s22 }
  0x61   : > { %318 = vmatprep.subr.bf16.mxu0 %v732_v7  ;;  %v220_v38 = vld [vmem:[%s1142_s2] sm:$0x3]  ;;  %v642_v57 = vld [vmem:[%s1142_s2 + $0x2] sm:$0x3]  ;;  %s536_s8 = sshll.u32 %s200_s5, 4  ;;  %s1096_s11 = scalar_lea.hbm %s1143_s3, %s660_s26  ;;  %s1098_s8 = int_to_ptr.vmem [resolvable:$true] %s536_s8 }
  0x62   : > { %v228_v37 = vsub.s32 1, %v223_v36  ;;  %v224_v44 = vsub.s32 0, %v223_v36  ;;  %s523_s27 = scalar_lea.sflag [#allocation4], %s1067_s30  ;;  %s833_s28 = scalar_lea.vmem %s1098_s8, 128 }
  0x63   : > { %477 = vmatpush1.bf16.msra.mxu1 %v755_v24  ;;  %p834_p4 = scmp.ne.s32.totalorder %s1098_s8, %s833_s28  ;;  %s910_s16 = smov [#allocation7]  }
  0x64   : > { %319 = vmatpush1.bf16.msra.mxu0 %v734_v8  ;;  %478 = vmatprep.subr.bf16.mxu1 %v756_v25  ;;  %v229_v39 = vrot.slane %v220_v38, %v228_v37  ;;  %v225_v47 = vrot.slane %v220_v38, %v224_v44  ;;  %v389_v58 = vrot.slane %v642_v57, %v228_v37  ;;  %s837_s29 = sshll.u32 %s910_s16, 4  ;;  %s838_s29 = int_to_ptr.vmem [resolvable:$false] %s837_s29 }
  0x65   : > { %320 = vmatprep.subr.bf16.mxu0 %v735_v9  ;;  %v385_v1 = vrot.slane %v642_v57, %v224_v44  ;;  %p835_p6 = pnand %p834_p4, %p1022_p12  ;;  %s839_s23 = scalar_lea.vmem %s838_s29, 256 }
  0x66   : > { %p840_p10 = scmp.lt.s32.totalorder %s1098_s8, %s838_s29  ;;  %p841_p13 = scmp.lt.s32.totalorder %s839_s23, %s833_s28 }
  0x67   : > { %479 = vmatpush1.bf16.msra.mxu1 %v758_v26  ;;  %p836_p8 = pneg %p835_p6 }
  0x68   : > { %321 = vmatpush1.bf16.msra.mxu0 %v737_v12  ;;  %480 = vmatprep.subr.bf16.mxu1 %v759_v27  ;;  %p842_p3 = por %p841_p13, %p840_p10 }
  0x69   : > { %322 = vmatprep.subr.bf16.mxu0 %v738_v14 }
  0x6a   : > { %p843_p7 = pnand %p842_p3, %p836_p8 }
  0x6b   : > { %481 = vmatpush1.bf16.msra.mxu1 %v761_v28 }
  0x6c   : > { %323 = vmatpush1.bf16.msra.mxu0 %v740_v15  ;;  %482 = vmatprep.subr.bf16.mxu1 %v762_v29 }
  0x6d   : > { %324 = vmatprep.subr.bf16.mxu0 %v741_v16 }
  0x6f   : > { %483 = vmatpush1.bf16.msra.mxu1 %v764_v30 }
  0x70   : > { %325 = vmatpush1.bf16.msra.mxu0 %v743_v17  ;;  %484 = vmatprep.subr.bf16.mxu1 %v765_v31 }
  0x71   : > { %326 = vmatprep.subr.bf16.mxu0 %v744_v18 }
  0x73   : > { %485 = vmatpush1.bf16.msra.mxu1 %v767_v32 }
  0x74   : > { %327 = vmatpush1.bf16.msra.mxu0 %v746_v19  ;;  %486 = vmatprep.subr.bf16.mxu1 %v768_v33 }
  0x77   : > { %345 = vmatmul.mubr.bf16.vlgmr.msra.gmra.mrb[0].mxu0 %v203_v21  ;;  %487 = vmatpush1.bf16.msra.mxu1 %v770_v34 }
 0x14a   : > { %v346_v40 = vpop.f32.mrb[0].mxu0 }
 0x14b   : > { %v348_v41 = vpop.f32.mrb[1].mxu0  ;;  %v347_v48 = vadd.f32 %v346_v40, %v225_v47 }
 0x14c   : > { %v349_v42 = vadd.f32 %v348_v41, %v229_v39  ;;  %v350_v43 = vpop.f32.mrb[2].mxu0 }
 0x14d   : > { %v351_v45 = vpop.f32.mrb[3].mxu0  ;;  %v353_v49 = vmax.f32 %v347_v48, 0.0 }
 0x14e   : > { %v354_v46 = vmul.f32 0.5, %v349_v42 }
 0x14f   : > { %v358_v52 = vsub.f32 %v353_v49, %v202_v20 }
 0x150   : > { %771 = vtanh.f32 %v354_v46 }
 0x15a   : > { %v772_v50 = vpop.eup %771 }
 0x15b   : > { %v356_v51 = vadd.f32 1.0, %v772_v50 }
 0x15d   : > { %v357_v53 = vmul.f32 0.5, %v356_v51 }
 0x15f   : > { %v359_v54 = vmul.f32 %v358_v52, %v357_v53 }
 0x161   : > { %v360_v55 = vadd.f32 %v359_v54, %v202_v20 }
 0x163   : > { %v361_v56 = vpack.c.bf16 %v360_v55, %v360_v55 }
 0x165   : > { %505 = vmatmul.mubr.bf16.vlgmr.msra.gmra.mrb[0].mxu1 %v361_v56 }
 0x238   : > { %v506_v59 = vpop.f32.mrb[0].mxu1 }
 0x239   : > { %v508_v60 = vpop.f32.mrb[1].mxu1  ;;  %v507_v2 = vadd.f32 %v506_v59, %v385_v1 }
 0x23a   : > { %v509_v61 = vadd.f32 %v508_v60, %v389_v58  ;;  %v510_v62 = vpop.f32.mrb[2].mxu1 }
 0x23b   : > { %v511_v63 = vpop.f32.mrb[3].mxu1  ;;  %v513_v3 = vmax.f32 %v507_v2, 0.0 }
 0x23c   : > { %v514_v0 = vmul.f32 0.5, %v509_v61 }
 0x23d   : > { %v518_v6 = vsub.f32 %v513_v3, %v360_v55 }
 0x23e   : > { %773 = vtanh.f32 %v514_v0 }
 0x248   : > { %v774_v4 = vpop.eup %773 }
 0x249   : > { %v516_v5 = vadd.f32 1.0, %v774_v4 }
 0x24b   : > { %v517_v7 = vmul.f32 0.5, %v516_v5 }
 0x24d   : > { %v519_v8 = vmul.f32 %v518_v6, %v517_v7 }
 0x24f   : > { %v520_v9 = vadd.f32 %v519_v8, %v360_v55 }
 0x251   : > { %521 = vst [vmem:[%s200_s5] sm:$0xff] %v520_v9 }
 0x252   : > { %846 = shalt.err (!%p843_p7)
}
 0x253   : > { %s847_s30 = scalar_lea.hbm %s1096_s11, 128  ;;  %s851_s7 = scalar_lea.hbm %s1143_s3, 256 }
 0x254   : > { %p848_p9 = scmp.ne.s32.totalorder %s1096_s11, %s847_s30  ;;  %p852_p0 = scmp.lt.u32.totalorder %s1096_s11, %s1143_s3 }
 0x255   : > { %p853_p11 = scmp.lt.u32.totalorder %s851_s7, %s847_s30  ;;  %p855_p4 = scmp.lt.u32.totalorder %s847_s30, %s1096_s11 }
 0x256   : > { %p849_p2 = pnand %p848_p9, %p1022_p12 }
 0x257   : > { %p854_p1 = por %p853_p11, %p852_p0 }
 0x258   : > { %p850_p5 = pneg %p849_p2 }
 0x259   : > { %p856_p6 = por %p855_p4, %p854_p1 }
 0x25b   : > { %p857_p8 = pnand %p856_p6, %p850_p5 }
 0x25d   : > { %860 = shalt.err (!%p857_p8)
}
 0x25e   : > { %669 = dma.vmem_to_hbm [thread:$0]  (%p1022_p12), %s1098_s8, 128, %s1096_s11, %s523_s27  }
 0x25f PF: > { %s548_s4 = sand.u32 1, %s891_s12   ;;  %p1158_p10 = scmp.ne.s32.totalorder %s1148_s19, 0 }
 0x260   : > { %p1159_p13 = scmp.ge.s32.totalorder %s903_s15, 2  ;;  %s549_s25 = scalar_lea.sflag [#allocation4], %s548_s4 }
 0x262   : > { %p680_p3 = pnand %p1159_p13, %p1158_p10 }
 0x264   : > { %886 = dma.done.wait (!%p680_p3), %s549_s25, 128  }
 0x265   : > { %888 = vsyncadd (!%p680_p3), %s549_s25, 4294967168  ;;  %p17_p7 = scmp.ge.s32.totalorder %s987_s24, 4   ;;  %s1160_s12 = smov %s895_s13 }
 0x266   : > { %s1161_s13 = smov %s899_s14  ;;  %s1162_s14 = smov %s1018_s17 }
 0x267   : > { %s1163_s15 = smov %s987_s24  ;;  %19 = sbr.rel (!%p17_p7) target bundleno = 6 (0x6), region = 83 }
 0x26e   :  { %554 = vsyncpa [#allocation3], 1 }
 0x26f   :  { %556 = vsyncpa [#allocation3 + $0x1], 1 }
 0x270   :  { %557 = vsyncpa [#allocation6], 1 }
 0x271   :  { %558 = vsyncpa [#allocation4], 1 }
 0x272   :  { %560 = vsyncpa [#allocation4 + $0x1], 1 }

</bundles_post_ra>
